<compile_context>
chip_gen: v7x
topology: tpu7x:2x2x1
jax: 0.10.0
libtpu: 0.0.40
codegen_flags: <defaults>
</compile_context>

<pallas_src>
import functools

import jax
import jax.numpy as jnp
from jax.experimental import pallas as pl
from jax.experimental.pallas import tpu as pltpu


def _int_power(x, n):
    """x ** n for a static positive integer n via repeated multiplies.

    Keeps the 'routing' power on the VPU instead of the log+exp lowering of `**`
    on the single EUP slot (which already carries the softmax exp)."""
    result = None
    base = x
    while n > 0:
        if n & 1:
            result = base if result is None else result * base
        n >>= 1
        if n:
            base = base * base
    return result


def _dynamic_sparse_attn_kernel(q_ref, k_ref, v_ref, o_ref, *, factor, pack_heads):
    # q_ref: (G, TL, E), k_ref: (G, S, E), v_ref: (G, S, D)
    # o_ref: (1, TL, G*D) if pack_heads else (G, TL, D)
    q = q_ref[...]
    k = k_ref[...]
    v = v_ref[...]

    # scores[g, l, s] = sum_e q[g, l, e] * k[g, s, e]
    # Batched contraction of E on both operands (no materialized k.T / XLU
    # transpose); bf16 operands (cast in the wrapper) with f32 accumulation on
    # the MXU.  NOTE: the PyTorch reference computes `scale` but never applies
    # it, so the logits are intentionally un-scaled here too.
    scores = jax.lax.dot_general(
        q, k,
        dimension_numbers=(((2,), (2,)), ((0,), (0,))),
        preferred_element_type=jnp.float32)                       # (G, TL, S) f32

    # dense = softmax(scores) along S, numerically stabilized.  All elementwise
    # math stays in f32 (v5e has no bf16 VPU/EUP, and the power below amplifies
    # relative error).  The exp is the likely binding slot (single EUP) for
    # small E/D, so no extra transcendentals are introduced anywhere else.
    m = jnp.max(scores, axis=-1, keepdims=True)
    e = jnp.exp(scores - m)
    dense = e * pl.reciprocal(jnp.sum(e, axis=-1, keepdims=True), approx=False)

    # routing = dense ** factor.  A static integer factor stays on the VPU as
    # repeated multiplies; a non-integer factor would lower to log+exp and
    # double the pressure on the already-busy EUP slot.
    if isinstance(factor, int) and factor >= 1:
        routing = _int_power(dense, factor)
    else:
        routing = dense ** factor

    # Reference: combined = (routing + dense)/2 ; sparse = combined / sum(combined).
    # Since sum(dense) == 1 (softmax row sum), this is algebraically
    #   sparse = (routing + dense) / (sum(routing) + 1)
    # which drops one full-tile reduction, one multiply pass and one reciprocal.
    denom = jnp.sum(routing, axis=-1, keepdims=True) + 1.0
    sparse = ((routing + dense) * pl.reciprocal(denom, approx=False)).astype(v.dtype)

    # One batched P @ V (contract S, batch over the G heads) -> (G, TL, D) with
    # f32 accumulation; replaces the previous per-head loop + lane concatenate.
    out = jax.lax.dot_general(
        sparse, v,
        dimension_numbers=(((2,), (1,)), ((0,), (0,))),
        preferred_element_type=jnp.float32)

    if pack_heads:
        # Heads packed along lanes: write each head's (TL, D) slab into its
        # static lane slice of the (1, TL, G*D) block (G*D is a multiple of 128
        # so the HBM writeback stays lane-dense).
        g_heads, _, d = out.shape
        for g in range(g_heads):
            o_ref[0, :, g * d:(g + 1) * d] = out[g].astype(o_ref.dtype)
    else:
        o_ref[...] = out.astype(o_ref.dtype)


def _vmem_capacity_bytes():
    """Physical VMEM per TensorCore for the current generation (fallback 64 MiB)."""
    try:
        cap = getattr(pltpu.get_tpu_info(), "vmem_capacity_bytes", None)
        if cap:
            return int(cap)
    except Exception:
        pass
    return 64 * 1024 * 1024  # conservative default (v7x per-core size)


def _choose_tiles(H, L, S, E, D, in_itemsize, out_itemsize, *,
                  max_group=8, max_tl=512, vmem_budget=32 * 1024 * 1024):
    """Pick (heads per grid step G, query tile TL, pack_heads, kv_buffers).

    Prefers the largest G dividing H with a lane-dense output layout, then the
    largest TL (more work per ~0.35us grid step / better HBM roofline), and
    double-buffered K/V; drops to single-buffered resident K/V before shrinking
    TL when VMEM is tight (K/V only changes once per head group)."""
    divisors = [g for g in range(1, min(H, max_group) + 1) if H % g == 0]
    if D % 128 == 0:
        candidates, pack = sorted(divisors, reverse=True), False
    else:
        lane_dense = [g for g in divisors if (g * D) % 128 == 0]
        if lane_dense:
            candidates, pack = sorted(lane_dense, reverse=True), True
        else:
            # TODO(synk): no lane-dense grouping exists for this (H, D); the HBM
            # writeback uses masked partial stores in this fallback.
            candidates, pack = sorted(divisors, reverse=True), False

    def est(g, tl, kv_bufs):
        io = (2 * in_itemsize * g * tl * E                 # q block (double-buffered)
              + kv_bufs * in_itemsize * g * S * (E + D)    # resident K/V blocks
              + 2 * out_itemsize * g * tl * D)             # output block (double-buffered)
        # ~5 live f32 (G, TL, S) temporaries (scores, e, dense, routing, sparse)
        # plus the f32 (G, TL, D) P@V result before the store cast.
        tmp = 5 * 4 * g * tl * S + 4 * g * tl * D
        return io + tmp

    def fit_tl(g, kv_bufs):
        tl = min(L, max_tl)
        if tl != L and tl % 8:
            tl = max(8, tl // 8 * 8)
        while tl > 8 and est(g, tl, kv_bufs) > vmem_budget:
            tl = max(8, (tl // 2) // 8 * 8)
        return tl if est(g, tl, kv_bufs) <= vmem_budget else None

    for g in candidates:
        tl2 = fit_tl(g, 2)
        tl1 = fit_tl(g, 1)
        if tl1 is not None and (tl2 is None or tl1 > tl2):
            return g, tl1, pack, 1
        if tl2 is not None:
            return g, tl2, pack, 2
    # Nothing fits the budget; fall back to the smallest configuration.
    # TODO(synk): a flash-style pass over S chunks would be needed here instead.
    return candidates[-1], 8, pack, 1


def full_attention(queries, keys, values, attn_mask=None, *, factor=5, scale=None,
                   mask_flag=True, output_attention=False,
                   mxu_dtype=jnp.bfloat16, max_query_tile=512, max_head_group=8):
    """JAX/Pallas equivalent of FullAttention.forward (dropout is identity in eval).

    `mxu_dtype` sets the matmul operand precision (bf16 by default: the MXUs on
    v5e/v6e/v7x are bf16-native and it halves K/V VMEM/HBM bytes); accumulation
    and all softmax/routing math remain f32."""
    if mask_flag and attn_mask is not None:
        # TODO(synk): masked_fill of the coarse scores (attn_mask path) is not implemented.
        raise NotImplementedError("attn_mask with mask_flag=True is not supported")
    del scale, output_attention  # `scale` is computed but never applied in the reference.

    if isinstance(factor, float) and float(factor).is_integer():
        factor = int(factor)

    B, L, H, E = queries.shape
    _, S, _, D = values.shape
    BH = B * H
    out_dtype = queries.dtype
    mxu_dtype = jnp.dtype(mxu_dtype if mxu_dtype is not None else out_dtype)

    vmem_cap = _vmem_capacity_bytes()   # generation-aware: 128 MiB v5e/v6e, 64 MiB v7x
    G, TL, pack, kv_bufs = _choose_tiles(
        H, L, S, E, D, mxu_dtype.itemsize, jnp.dtype(out_dtype).itemsize,
        max_group=max_head_group, max_tl=max_query_tile,
        vmem_budget=vmem_cap // 2)
    n_lt = pl.cdiv(L, TL)

    # Head-major layout so each grid step DMA's G contiguous (L/S, E/D) planes.
    # TODO(synk): these transposes + the final unpack are 4 extra HBM passes;
    # accepting/producing head-major tensors at the op boundary would remove them.
    q_hm = jnp.transpose(queries, (0, 2, 1, 3)).reshape(BH, L, E).astype(mxu_dtype)
    k_hm = jnp.transpose(keys, (0, 2, 1, 3)).reshape(BH, S, E).astype(mxu_dtype)
    v_hm = jnp.transpose(values, (0, 2, 1, 3)).reshape(BH, S, D).astype(mxu_dtype)

    # K/V index_maps ignore the L-tile axis (blocks stay resident across it).
    # When VMEM is tight the tile chooser requests single-buffered K/V; the
    # exposed refetch then happens once per head group (amortized over n_lt).
    kv_kwargs = {"pipeline_mode": pl.Buffered(1)} if kv_bufs == 1 else {}
    q_spec = pl.BlockSpec((G, TL, E), lambda g, lt: (g, lt, 0))
    k_spec = pl.BlockSpec((G, S, E), lambda g, lt: (g, 0, 0), **kv_kwargs)
    v_spec = pl.BlockSpec((G, S, D), lambda g, lt: (g, 0, 0), **kv_kwargs)

    if pack:
        out_shape = jax.ShapeDtypeStruct((BH // G, L, G * D), out_dtype)
        out_spec = pl.BlockSpec((1, TL, G * D), lambda g, lt: (g, lt, 0))
    else:
        out_shape = jax.ShapeDtypeStruct((BH, L, D), out_dtype)
        out_spec = pl.BlockSpec((G, TL, D), lambda g, lt: (g, lt, 0))

    kernel = functools.partial(_dynamic_sparse_attn_kernel, factor=factor,
                               pack_heads=pack)

    in_bytes = (BH * L * E + BH * S * E + BH * S * D) * mxu_dtype.itemsize
    out_bytes = BH * L * D * jnp.dtype(out_dtype).itemsize
    cost = pl.CostEstimate(flops=2 * BH * L * S * (E + D),
                           transcendentals=BH * L * S,
                           bytes_accessed=in_bytes + out_bytes)

    out = pl.pallas_call(
        kernel,
        out_shape=out_shape,
        grid_spec=pltpu.PrefetchScalarGridSpec(
            num_scalar_prefetch=0,
            grid=(BH // G, n_lt),
            in_specs=[q_spec, k_spec, v_spec],
            out_specs=out_spec,
        ),
        compiler_params=pltpu.CompilerParams(
            # Only the head-group axis is megacore-shardable: splitting the
            # L-tile axis across TensorCores would duplicate the resident K/V DMA.
            dimension_semantics=("parallel", "arbitrary"),
            vmem_limit_bytes=int(vmem_cap * 0.75)),
        cost_estimate=cost,
    )(q_hm, k_hm, v_hm)

    # TODO(synk): for very large S, restructure as a flash-style pass over S
    # chunks (online max / sum-exp, chunked (routing+dense)@V accumulation) so
    # VMEM stops scaling with S; currently K/V and the (G, TL, S) scores are
    # fully resident per grid step.

    if pack:
        out = out.reshape(B, H // G, L, G, D)
        V = jnp.transpose(out, (0, 2, 1, 3, 4)).reshape(B, L, H, D)
    else:
        V = jnp.transpose(out.reshape(B, H, L, D), (0, 2, 1, 3))
    return V, None


def _reference(queries, keys, values, factor=5, mxu_dtype=jnp.float32):
    """Literal port of the PyTorch math (optionally mirroring the kernel's
    bf16 MXU-operand casts so the comparison isolates kernel correctness)."""
    q = queries.astype(mxu_dtype)
    k = keys.astype(mxu_dtype)
    v = values.astype(mxu_dtype)
    scores = jnp.einsum('blhe,bshe->bhls', q, k, preferred_element_type=jnp.float32)
    dense = jax.nn.softmax(scores, axis=-1)
    routing = dense ** factor
    combined = (routing + dense) / 2.0
    sparse = combined / jnp.sum(combined, axis=-1, keepdims=True)
    out = jnp.einsum('bhls,bshd->blhd', sparse.astype(mxu_dtype), v,
                     preferred_element_type=jnp.float32)
    return out.astype(queries.dtype)


if __name__ == "__main__":
    key = jax.random.PRNGKey(0)
    B, L, S, H, E, D = 2, 8, 8, 4, 32, 32
    kq, kk, kv = jax.random.split(key, 3)
    queries = jax.random.normal(kq, (B, L, H, E), dtype=jnp.float32)
    keys = jax.random.normal(kk, (B, S, H, E), dtype=jnp.float32)
    values = jax.random.normal(kv, (B, S, H, D), dtype=jnp.float32)

    # Default path: bf16 MXU operands; compared against a reference that applies
    # the same operand casts (bf16 rounding makes a bit-exact f32 match impossible).
    V, _ = full_attention(queries, keys, values, attn_mask=None, factor=5)
    V = jax.block_until_ready(V)
    assert V.shape == (B, L, H, D)
    ref_bf16 = _reference(queries, keys, values, factor=5, mxu_dtype=jnp.bfloat16)
    err_bf16 = float(jnp.max(jnp.abs(V - ref_bf16)))
    assert err_bf16 < 5e-2, err_bf16

    # Full-f32 MXU path: tight check against the pure-f32 reference.
    V32, _ = full_attention(queries, keys, values, attn_mask=None, factor=5,
                            mxu_dtype=jnp.float32)
    V32 = jax.block_until_ready(V32)
    ref_f32 = _reference(queries, keys, values, factor=5, mxu_dtype=jnp.float32)
    err_f32 = float(jnp.max(jnp.abs(V32 - ref_f32)))
    assert err_f32 < 1e-3, err_f32

    print("KERNEL_OK")
</pallas_src>

<mosaic_0001>
module attributes {stable_mosaic.version = 11 : i64} {
  func.func @_dynamic_sparse_attn_kernel(%arg0: i32, %arg1: i32, %arg2: memref<4x8x32xbf16, #tpu.memory_space<vmem>>, %arg3: memref<4x8x32xbf16, #tpu.memory_space<vmem>>, %arg4: memref<4x8x32xbf16, #tpu.memory_space<vmem>>, %arg5: memref<1x8x128xf32, #tpu.memory_space<vmem>>) attributes {dimension_semantics = [#tpu.dimension_semantics<parallel>, #tpu.dimension_semantics<arbitrary>], iteration_bounds = array<i64: 2, 1>, scalar_prefetch = 0 : i64, scratch_operands = 0 : i64, tpu.core_type = #tpu.core_type<tc>, window_params = [{transform_indices = @transform_0, window_bounds = array<i64: 4, 8, 32>}, {transform_indices = @transform_1, window_bounds = array<i64: 4, 8, 32>}, {transform_indices = @transform_2, window_bounds = array<i64: 4, 8, 32>}, {transform_indices = @transform_3, window_bounds = array<i64: 1, 8, 128>}]} {
    %c0 = arith.constant 0 : index
    %c0_0 = arith.constant 0 : index
    %c0_1 = arith.constant 0 : index
    %0 = vector.load %arg2[%c0, %c0_0, %c0_1] : memref<4x8x32xbf16, #tpu.memory_space<vmem>>, vector<4x8x32xbf16>
    %c0_2 = arith.constant 0 : index
    %c0_3 = arith.constant 0 : index
    %c0_4 = arith.constant 0 : index
    %1 = vector.load %arg3[%c0_2, %c0_3, %c0_4] : memref<4x8x32xbf16, #tpu.memory_space<vmem>>, vector<4x8x32xbf16>
    %c0_5 = arith.constant 0 : index
    %c0_6 = arith.constant 0 : index
    %c0_7 = arith.constant 0 : index
    %2 = vector.load %arg4[%c0_5, %c0_6, %c0_7] : memref<4x8x32xbf16, #tpu.memory_space<vmem>>, vector<4x8x32xbf16>
    %cst = arith.constant dense<0.000000e+00> : vector<4x8x8xf32>
    %3 = tpu.matmul %0, %1, %cst {dimension_numbers = #tpu.dot_dimension_numbers<[2], [2], [1], [1], [0, 0, 0, 1, 1, 1], [0], [0]>} : vector<4x8x32xbf16>, vector<4x8x32xbf16>, vector<4x8x8xf32> -> vector<4x8x8xf32>
    %cst_8 = arith.constant dense<0xFF800000> : vector<4x8xf32>
    %4 = vector.multi_reduction <maximumf>, %3, %cst_8 [2] : vector<4x8x8xf32> to vector<4x8xf32>
    %5 = vector.shape_cast %4 : vector<4x8xf32> to vector<4x8x1xf32>
    %6 = vector.broadcast %5 : vector<4x8x1xf32> to vector<4x8x8xf32>
    %7 = arith.subf %3, %6 : vector<4x8x8xf32>
    %8 = math.exp %7 : vector<4x8x8xf32>
    %cst_9 = arith.constant dense<0.000000e+00> : vector<4x8xf32>
    %9 = vector.multi_reduction <add>, %8, %cst_9 [2] : vector<4x8x8xf32> to vector<4x8xf32>
    %10 = vector.shape_cast %9 : vector<4x8xf32> to vector<4x8x1xf32>
    %11 = tpu.reciprocal %10 : vector<4x8x1xf32> -> vector<4x8x1xf32>
    %12 = vector.broadcast %11 : vector<4x8x1xf32> to vector<4x8x8xf32>
    %13 = arith.mulf %8, %12 : vector<4x8x8xf32>
    %14 = arith.mulf %13, %13 : vector<4x8x8xf32>
    %15 = arith.mulf %14, %14 : vector<4x8x8xf32>
    %16 = arith.mulf %13, %15 : vector<4x8x8xf32>
    %cst_10 = arith.constant dense<0.000000e+00> : vector<4x8xf32>
    %17 = vector.multi_reduction <add>, %16, %cst_10 [2] : vector<4x8x8xf32> to vector<4x8xf32>
    %18 = vector.shape_cast %17 : vector<4x8xf32> to vector<4x8x1xf32>
    %cst_11 = arith.constant 1.000000e+00 : f32
    %19 = vector.broadcast %cst_11 : f32 to vector<4x8x1xf32>
    %20 = arith.addf %18, %19 : vector<4x8x1xf32>
    %21 = arith.addf %16, %13 : vector<4x8x8xf32>
    %22 = tpu.reciprocal %20 : vector<4x8x1xf32> -> vector<4x8x1xf32>
    %23 = vector.broadcast %22 : vector<4x8x1xf32> to vector<4x8x8xf32>
    %24 = arith.mulf %21, %23 : vector<4x8x8xf32>
    %25 = arith.truncf %24 : vector<4x8x8xf32> to vector<4x8x8xbf16>
    %cst_12 = arith.constant dense<0.000000e+00> : vector<4x8x32xf32>
    %26 = tpu.matmul %25, %2, %cst_12 {dimension_numbers = #tpu.dot_dimension_numbers<[2], [1], [1], [2], [0, 0, 0, 1, 1, 2], [0], [0]>} : vector<4x8x8xbf16>, vector<4x8x32xbf16>, vector<4x8x32xf32> -> vector<4x8x32xf32>
    %27 = vector.extract_strided_slice %26 {offsets = [0, 0, 0], sizes = [1, 8, 32], strides = [1, 1, 1]} : vector<4x8x32xf32> to vector<1x8x32xf32>
    %28 = vector.shape_cast %27 : vector<1x8x32xf32> to vector<8x32xf32>
    %c0_13 = arith.constant 0 : index
    %c0_14 = arith.constant 0 : index
    %c0_15 = arith.constant 0 : index
    %29 = vector.load %arg5[%c0_13, %c0_14, %c0_15] : memref<1x8x128xf32, #tpu.memory_space<vmem>>, vector<1x8x32xf32>
    %30 = vector.shape_cast %29 : vector<1x8x32xf32> to vector<8x32xf32>
    %31 = vector.shape_cast %28 : vector<8x32xf32> to vector<1x8x32xf32>
    tpu.vector_store %arg5[%c0_13, %c0_14, %c0_15], %31 {strides = array<i32>} : memref<1x8x128xf32, #tpu.memory_space<vmem>>, vector<1x8x32xf32>,
    %32 = vector.extract_strided_slice %26 {offsets = [1, 0, 0], sizes = [1, 8, 32], strides = [1, 1, 1]} : vector<4x8x32xf32> to vector<1x8x32xf32>
    %33 = vector.shape_cast %32 : vector<1x8x32xf32> to vector<8x32xf32>
    %c0_16 = arith.constant 0 : index
    %c0_17 = arith.constant 0 : index
    %c32 = arith.constant 32 : index
    %34 = vector.load %arg5[%c0_16, %c0_17, %c32] : memref<1x8x128xf32, #tpu.memory_space<vmem>>, vector<1x8x32xf32>
    %35 = vector.shape_cast %34 : vector<1x8x32xf32> to vector<8x32xf32>
    %36 = vector.shape_cast %33 : vector<8x32xf32> to vector<1x8x32xf32>
    tpu.vector_store %arg5[%c0_16, %c0_17, %c32], %36 {strides = array<i32>} : memref<1x8x128xf32, #tpu.memory_space<vmem>>, vector<1x8x32xf32>,
    %37 = vector.extract_strided_slice %26 {offsets = [2, 0, 0], sizes = [1, 8, 32], strides = [1, 1, 1]} : vector<4x8x32xf32> to vector<1x8x32xf32>
    %38 = vector.shape_cast %37 : vector<1x8x32xf32> to vector<8x32xf32>
    %c0_18 = arith.constant 0 : index
    %c0_19 = arith.constant 0 : index
    %c64 = arith.constant 64 : index
    %39 = vector.load %arg5[%c0_18, %c0_19, %c64] : memref<1x8x128xf32, #tpu.memory_space<vmem>>, vector<1x8x32xf32>
    %40 = vector.shape_cast %39 : vector<1x8x32xf32> to vector<8x32xf32>
    %41 = vector.shape_cast %38 : vector<8x32xf32> to vector<1x8x32xf32>
    tpu.vector_store %arg5[%c0_18, %c0_19, %c64], %41 {strides = array<i32>} : memref<1x8x128xf32, #tpu.memory_space<vmem>>, vector<1x8x32xf32>,
    %42 = vector.extract_strided_slice %26 {offsets = [3, 0, 0], sizes = [1, 8, 32], strides = [1, 1, 1]} : vector<4x8x32xf32> to vector<1x8x32xf32>
    %43 = vector.shape_cast %42 : vector<1x8x32xf32> to vector<8x32xf32>
    %c0_20 = arith.constant 0 : index
    %c0_21 = arith.constant 0 : index
    %c96 = arith.constant 96 : index
    %44 = vector.load %arg5[%c0_20, %c0_21, %c96] : memref<1x8x128xf32, #tpu.memory_space<vmem>>, vector<1x8x32xf32>
    %45 = vector.shape_cast %44 : vector<1x8x32xf32> to vector<8x32xf32>
    %46 = vector.shape_cast %43 : vector<8x32xf32> to vector<1x8x32xf32>
    tpu.vector_store %arg5[%c0_20, %c0_21, %c96], %46 {strides = array<i32>} : memref<1x8x128xf32, #tpu.memory_space<vmem>>, vector<1x8x32xf32>,
    return
  }
  func.func @transform_0(%arg0: i32, %arg1: i32) -> (i32, i32, i32) {
    %c0_i32 = arith.constant 0 : i32
    %c0_i32_0 = arith.constant 0 : i32
    return %arg0, %arg1, %c0_i32 : i32, i32, i32
  }
  func.func @transform_1(%arg0: i32, %arg1: i32) -> (i32, i32, i32) {
    %c0_i32 = arith.constant 0 : i32
    %c0_i32_0 = arith.constant 0 : i32
    %c0_i32_1 = arith.constant 0 : i32
    return %arg0, %c0_i32, %c0_i32_0 : i32, i32, i32
  }
  func.func @transform_2(%arg0: i32, %arg1: i32) -> (i32, i32, i32) {
    %c0_i32 = arith.constant 0 : i32
    %c0_i32_0 = arith.constant 0 : i32
    %c0_i32_1 = arith.constant 0 : i32
    return %arg0, %c0_i32, %c0_i32_0 : i32, i32, i32
  }
  func.func @transform_3(%arg0: i32, %arg1: i32) -> (i32, i32, i32) {
    %c0_i32 = arith.constant 0 : i32
    %c0_i32_0 = arith.constant 0 : i32
    return %arg0, %arg1, %c0_i32 : i32, i32, i32
  }
}

</mosaic_0001>

<bundles_post_ra>
// kernel: tpu_custom_call.1
= control target key start
LH: loop header
LB: loop body
LE: loop exit
PB: predicated region body
PF: predicated region fallthrough
CT: control target
= control target key end

     0   :  { %s1669_s0 = inlined_call_operand.hbm [shape: bf16[8,8,32], index: 0, kind: input, shape index: {}]   ;;  %s1670_s1 = inlined_call_operand.hbm [shape: bf16[8,8,32], index: 1, kind: input, shape index: {}]   ;;  %s1671_s2 = inlined_call_operand.hbm [shape: bf16[8,8,32], index: 2, kind: input, shape index: {}]   ;;  %s1672_s3 = inlined_call_operand.hbm [shape: f32[2,8,128], index: 3, kind: output, shape index: {}]  }
   0x1   :  { %1682 = sst [smem:[#allocation15_spill]] %s1670_s1 }
   0x2   :  { %8 = vsyncpa [#allocation3], 0 }
   0x3   :  { %10 = vsyncpa [#allocation3 + $0x1], 0 }
   0x4   :  { %11 = vsyncpa [#allocation6], 0 }
   0x5   :  { %13 = vsyncpa [#allocation6 + $0x1], 0 }
   0x6   :  { %14 = vsyncpa [#allocation4], 0 }
   0x7   :  { %16 = vsyncpa [#allocation4 + $0x1], 0  ;;  %s1325_s12 = smov 0   ;;  %s1327_s13 = smov 0  }
   0x8   :  { %s1329_s14 = smov 0   ;;  %s1331_s15 = smov 0  }
   0x9   :  { %s1333_s16 = smov 0   ;;  %s1335_s17 = smov 0  }
   0xa LB: > { %1683 = sst [smem:[#allocation12_spill]] %s1288_s16  ;;  %s1356_s18 = sadd.s32 4294967295, %s1292_s17   ;;  %s1292_s17 = sphi %s1335_s17, %s22_s17   ;;  %s1288_s16 = sphi %s1333_s16, %s1706_s16   ;;  %s1284_s15 = sphi %s1331_s15, %s1705_s15   ;;  %s1280_s14 = sphi %s1329_s14, %s1709_s14   ;;  %s1276_s13 = sphi %s1327_s13, %s1708_s13   ;;  %s1272_s12 = sphi %s1325_s12, %s1707_s12  }
   0xb   : > { %s917_s19 = sadd.s32 4294967294, %s1292_s17   ;;  %s34_s20 = sadd.s32 1, %s1288_s16 }
   0xc   : > { %s43_s21 = sadd.s32 1, %s1280_s14  ;;  %p36_p0 = scmp.ge.s32.totalorder %s34_s20, 2 }
   0xd   : > { %p50_p1 = scmp.ne.s32.totalorder %s1280_s14, %s1276_s13  ;;  %p51_p2 = scmp.eq.s32.totalorder %s1292_s17, 0 }
   0xe   : > { %p56_p3 = scmp.ne.s32.totalorder %s1276_s13, %s1272_s12  ;;  %s1711_s20 = smov (%p36_p0, %s34_s20), 0 }
   0xf   : > { %1684 = sst [smem:[#allocation13_spill]] %s1711_s20  ;;  %p1368_p4 = por %p51_p2, %p50_p1 }
  0x10   : > { %p57_p5 = scmp.eq.s32.totalorder %s1356_s18, 0  ;;  %s38_s23 = ssub.s32 %s1288_s16, %s1711_s20 }
  0x11   : > { %p134_p6 = scmp.eq.s32.totalorder %s1356_s18, 1  ;;  %p41_p7 = scmp.eq.s32.totalorder %s38_s23, 0 }
  0x12   : > { %p1376_p8 = por %p57_p5, %p56_p3  ;;  %p140_p10 = scmp.eq.s32.totalorder %s917_s19, 1 }
  0x13   : > { %p1380_p9 = por %p134_p6, %p50_p1  ;;  %p1035_p13 = scmp.lt.s32.totalorder %s1292_s17, 2 }
  0x14   : > { %s1686_s24 = scalar_select %p1376_p8, 1, 0 }
  0x15   : > { %s1687_s25 = scalar_select %p1380_p9, 1, 0 }
  0x16   : > { %s1385_s26 = scalar_select %p41_p7, %s1280_s14, %s43_s21  }
  0x17   : > { %p1387_p11 = por %p140_p10, %p56_p3  ;;  %s1675_s28 = sand.u32 1, %s1280_s14  }
  0x18   : > { %1688 = sst [smem:[#allocation14_spill]] %s1385_s26  ;;  %s1396_s29 = sshll.u32 %s1675_s28, 4 }
  0x19   : > { %s1689_s27 = scalar_select %p1387_p11, 1, 0 }
  0x1a   : > { %s1399_s30 = sshll.u32 %s1288_s16, 8  ;;  %p1403_p0 = pnand %p1035_p13, %p1368_p4 }
  0x1b   : > { %s182_s5 = sand.u32 1, %s1292_s17   ;;  %s1691_s1 = sld [smem:[#allocation15_spill]] }
  0x1c   : > { %s186_s9 = scalar_lea.vmem [#allocation5], %s1396_s29  ;;  %s1419_s11 = scalar_lea.sflag [#allocation6], %s182_s5 }
  0x1d   : > { %s193_s10 = sshll.u32 %s186_s9, 4  ;;  %p1425_p4 = pneg %p1403_p0  ;;  %s1416_s10 = int_to_ptr.vmem [resolvable:$true] %s193_s10 }
  0x21   : > { %s1412_s8 = scalar_lea.hbm %s1691_s1, %s1399_s30  ;;  %s1121_s6 = scalar_lea.hbm %s1691_s1, 512 }
  0x22   : > { %s1116_s19 = scalar_lea.hbm %s1412_s8, 256  ;;  %p1122_p7 = scmp.lt.u32.totalorder %s1412_s8, %s1691_s1 }
  0x23   : > { %p1117_p3 = scmp.ne.s32.totalorder %s1412_s8, %s1116_s19  ;;  %p1123_p10 = scmp.lt.u32.totalorder %s1121_s6, %s1116_s19 }
  0x24   : > { %p1125_p12 = scmp.lt.u32.totalorder %s1116_s19, %s1412_s8 }
  0x25   : > { %p1119_p5 = pnand %p1425_p4, %p1117_p3  ;;  %p1124_p13 = por %p1123_p10, %p1122_p7 }
  0x27   : > { %p1120_p6 = pneg %p1119_p5  ;;  %p1126_p1 = por %p1125_p12, %p1124_p13 }
  0x29   : > { %p1127_p2 = pnand %p1126_p1, %p1120_p6 }
  0x2b   : > { %1130 = shalt.err (!%p1127_p2)
}
  0x2c   : > { %s1131_s5 = scalar_lea.vmem %s1416_s10, 256  ;;  %s1294_s22 = smov [#allocation5]  }
  0x2d   : > { %p1132_p3 = scmp.ne.s32.totalorder %s1416_s10, %s1131_s5  ;;  %s1136_s23 = sshll.u32 %s1294_s22, 4  ;;  %s1137_s23 = int_to_ptr.vmem [resolvable:$false] %s1136_s23 }
  0x2e   : > { %s1138_s7 = scalar_lea.vmem %s1137_s23, 512  ;;  %p1139_p9 = scmp.lt.s32.totalorder %s1416_s10, %s1137_s23 }
  0x2f   : > { %p1134_p5 = pnand %p1132_p3, %p1425_p4  ;;  %p1140_p8 = scmp.lt.s32.totalorder %s1138_s7, %s1131_s5 }
  0x31   : > { %p1135_p11 = pneg %p1134_p5  ;;  %p1141_p7 = por %p1140_p8, %p1139_p9 }
  0x33   : > { %p1142_p10 = pnand %p1141_p7, %p1135_p11 }
  0x35   : > { %1145 = shalt.err (!%p1142_p10)
}
  0x36   : > { %s1676_s19 = smov 64   ;;  %s1678_s6 = smov 4  }
  0x37   : > { %1027 = dma.hbm_to_vmem [thread:$0]  (!%p1403_p0), %s1412_s8, 256, %s1416_s10, %s1419_s11, %s1676_s19, %s1676_s19, %s1678_s6  }
  0x38   : > { %p1693_p8 = scmp.lt.s32.totalorder %s1292_s17, 3  ;;  %p1694_p9 = scmp.ge.s32.totalorder %s1292_s17, 1 }
  0x39   : > { %s1464_s23 = scalar_lea.hbm %s1669_s0, %s1399_s30  ;;  %s164_s7 = scalar_lea.vmem [#allocation2], %s1396_s29 }
  0x3a   : > { %p1456_p11 = pnand %p1694_p9, %p1693_p8  ;;  %s172_s28 = sshll.u32 %s164_s7, 4  ;;  %s1467_s28 = int_to_ptr.vmem [resolvable:$true] %s172_s28 }
  0x3b   : > { %s1473_s19 = scalar_lea.hbm %s1671_s2, %s1399_s30  ;;  %s1696_s6 = sand.u32 1, %s1280_s14  }
  0x3c   : > { %s1695_s9 = scalar_select %p1456_p11, 1, 0 }
  0x3d   : > { %s1477_s1 = scalar_lea.sflag [#allocation3], %s1696_s6  ;;  %s1146_s20 = scalar_lea.hbm %s1464_s23, 256 }
  0x3e   : > { %p1147_p12 = scmp.ne.s32.totalorder %s1464_s23, %s1146_s20  ;;  %s1151_s16 = scalar_lea.hbm %s1669_s0, 512 }
  0x3f   : > { %p1152_p6 = scmp.lt.u32.totalorder %s1464_s23, %s1669_s0  ;;  %p1153_p13 = scmp.lt.u32.totalorder %s1151_s16, %s1146_s20 }
  0x40   : > { %p1149_p1 = pnand %p1147_p12, %p1425_p4  ;;  %p1155_p5 = scmp.lt.u32.totalorder %s1146_s20, %s1464_s23 }
  0x41   : > { %p1154_p3 = por %p1153_p13, %p1152_p6 }
  0x42   : > { %p1150_p2 = pneg %p1149_p1 }
  0x43   : > { %p1156_p7 = por %p1155_p5, %p1154_p3 }
  0x45   : > { %p1157_p10 = pnand %p1156_p7, %p1150_p2 }
  0x47   : > { %1160 = shalt.err (!%p1157_p10)
}
  0x48   : > { %s1161_s30 = scalar_lea.vmem %s1467_s28, 256  ;;  %s1297_s6 = smov [#allocation2]  }
  0x49   : > { %p1162_p8 = scmp.ne.s32.totalorder %s1467_s28, %s1161_s30  ;;  %s1166_s8 = sshll.u32 %s1297_s6, 4  ;;  %s1167_s8 = int_to_ptr.vmem [resolvable:$false] %s1166_s8 }
  0x4a   : > { %s1168_s26 = scalar_lea.vmem %s1167_s8, 512  ;;  %p1169_p1 = scmp.lt.s32.totalorder %s1467_s28, %s1167_s8 }
  0x4b   : > { %p1164_p9 = pnand %p1162_p8, %p1425_p4  ;;  %p1170_p11 = scmp.lt.s32.totalorder %s1168_s26, %s1161_s30 }
  0x4d   : > { %p1165_p12 = pneg %p1164_p9  ;;  %p1171_p6 = por %p1170_p11, %p1169_p1 }
  0x4f   : > { %p1172_p13 = pnand %p1171_p6, %p1165_p12 }
  0x51   : > { %1175 = shalt.err (!%p1172_p13)
}
  0x52   : > { %s1697_s16 = smov 4   ;;  %s1698_s20 = smov 64  }
  0x53   : > { %1024 = dma.hbm_to_vmem [thread:$0]  (!%p1403_p0), %s1464_s23, 256, %s1467_s28, %s1477_s1, %s1698_s20, %s1698_s20, %s1697_s16  }
  0x54   : > { %s207_s10 = scalar_lea.vmem [#allocation7], %s1396_s29  ;;  %s1176_s22 = scalar_lea.hbm %s1473_s19, 256 }
  0x55   : > { %s214_s5 = sshll.u32 %s207_s10, 4  ;;  %p1177_p11 = scmp.ne.s32.totalorder %s1473_s19, %s1176_s22  ;;  %s1505_s5 = int_to_ptr.vmem [resolvable:$true] %s214_s5 }
  0x56   : > { %s1181_s6 = scalar_lea.hbm %s1671_s2, 512  ;;  %p1182_p5 = scmp.lt.u32.totalorder %s1473_s19, %s1671_s2 }
  0x57   : > { %p1179_p2 = pnand %p1177_p11, %p1425_p4  ;;  %p1183_p7 = scmp.lt.u32.totalorder %s1181_s6, %s1176_s22 }
  0x58   : > { %p1185_p8 = scmp.lt.u32.totalorder %s1176_s22, %s1473_s19 }
  0x59   : > { %p1180_p3 = pneg %p1179_p2  ;;  %p1184_p10 = por %p1183_p7, %p1182_p5 }
  0x5b   : > { %p1186_p9 = por %p1185_p8, %p1184_p10 }
  0x5d   : > { %p1187_p12 = pnand %p1186_p9, %p1180_p3 }
  0x5f   : > { %1190 = shalt.err (!%p1187_p12)
}
  0x60   : > { %s1191_s1 = scalar_lea.vmem %s1505_s5, 256  ;;  %s1298_s28 = smov [#allocation7]  }
  0x61   : > { %p1192_p1 = scmp.ne.s32.totalorder %s1505_s5, %s1191_s1  ;;  %s1196_s29 = sshll.u32 %s1298_s28, 4  ;;  %s1197_s29 = int_to_ptr.vmem [resolvable:$false] %s1196_s29 }
  0x62   : > { %s1198_s23 = scalar_lea.vmem %s1197_s29, 512  ;;  %p1199_p11 = scmp.lt.s32.totalorder %s1505_s5, %s1197_s29 }
  0x63   : > { %p1194_p6 = pnand %p1192_p1, %p1425_p4  ;;  %p1200_p2 = scmp.lt.s32.totalorder %s1198_s23, %s1191_s1 }
  0x65   : > { %p1195_p13 = pneg %p1194_p6  ;;  %p1201_p5 = por %p1200_p2, %p1199_p11 }
  0x67   : > { %p1202_p7 = pnand %p1201_p5, %p1195_p13 }
  0x69   : > { %1205 = shalt.err (!%p1202_p7)
}
  0x6a   : > { %1030 = dma.hbm_to_vmem [thread:$0]  (!%p1403_p0), %s1473_s19, 256, %s1505_s5, %s1419_s11, %s1698_s20, %s1698_s20, %s1697_s16  }
  0x6b   : > { %p1699_p4 = scmp.ne.s32.totalorder %s1695_s9, 0 }
  0x6c   : > { %s1535_s21 = sand.u32 (!%p1699_p4), 1, %s1276_s13   ;;  %p1700_p3 = scmp.ne.s32.totalorder (!%p1699_p4), %s1686_s24, 0 }
  0x6d   : > { %226 = sbr.rel (%p1699_p4) target bundleno = 1175 (0x497), region = 32  ;;  %s1538_s10 = sshll.u32 (!%p1699_p4), %s1535_s21, 4 }
  0x6e   : > { %s229_s4 = scalar_lea.sflag (!%p1699_p4), [#allocation3], %s1535_s21  ;;  %s1542_s22 = scalar_lea.vmem (!%p1699_p4), [#allocation2], %s1538_s10 }
  0x74   : > { %1259 = dma.done.wait (%p1700_p3), %s229_s4, 256  }
  0x75   : > { %1261 = vsyncadd (%p1700_p3), %s229_s4, 4294967040  ;;  %s237_s11 = sand.u32 1, %s1356_s18   ;;  %s241_s9 = scalar_lea.vmem [#allocation5], %s1538_s10 }
  0x76   : > { %s238_s19 = scalar_lea.sflag [#allocation6], %s237_s11 }
  0x77   : > { %1263 = dma.done.wait (%p1700_p3), %s238_s19, 512  }
  0x78   : > { %1265 = vsyncadd (%p1700_p3), %s238_s19, 4294966784  ;;  %v1299_v0 = vmov 0.0   ;;  %vm1300_vm0 = vmmov 0   ;;  %vm299_vm1 = vcmask 261120   ;;  %v291_v1 = vld [vmem:[%s241_s9] sm:$0xf] }
  0x79   : > { %965 = vmatprep.subr.bf16.mxu0 %v1299_v0  ;;  %971 = vmatprep.subr.bf16.mxu1 %v1299_v0  ;;  %v292_v2 = vld [vmem:[%s241_s9 + $0x4] sm:$0xf]  ;;  %v304_v3 = vsel %vm299_vm1, %v291_v1, 0  ;;  %v293_v5 = vld [vmem:[%s241_s9 + $0x8] sm:$0xf]  ;;  %vm484_vm2 = vcmask 64512  }
  0x7a   : > { %967 = vmatprep.mubr.msk.bf16.mxu0 %vm1300_vm0, %v1299_v0  ;;  %973 = vmatprep.mubr.msk.bf16.mxu1 %vm1300_vm0, %v1299_v0  ;;  %v350_v4 = vsel %vm299_vm1, %v292_v2, 0  ;;  %v294_v6 = vld [vmem:[%s241_s9 + $0xc] sm:$0xf]  ;;  %v287_v7 = vld [vmem:[%s1542_s22] sm:$0xf]  ;;  %v396_v9 = vsel %vm299_vm1, %v293_v5, 0 }
  0x7b   : > { %966 = vmatpush3.bf16.xpose.msra.mxu0 %v304_v3  ;;  %972 = vmatpush3.bf16.xpose.msra.mxu1 %v350_v4  ;;  %v288_v8 = vld [vmem:[%s1542_s22 + $0x4] sm:$0xf]  ;;  %v442_v10 = vsel %vm299_vm1, %v294_v6, 0  ;;  %v289_v11 = vld [vmem:[%s1542_s22 + $0x8] sm:$0xf]  ;;  %s250_s18 = scalar_lea.vmem [#allocation7], %s1538_s10 }
  0x7c   : > { %977 = vmatprep.subr.bf16.mxu0 %v1299_v0  ;;  %983 = vmatprep.subr.bf16.mxu1 %v1299_v0  ;;  %v290_v12 = vld [vmem:[%s1542_s22 + $0xc] sm:$0xf]  ;;  %vm576_vm3 = vcmask 1043456   ;;  %s933_s24 = sshll.u32 %s1535_s21, 3  ;;  %s1301_s20 = smov 32   ;;  %vm763_vm4 = vcmask 523520  }
  0x7d   : > { %s1608_s16 = scalar_lea.vmem [#allocation8], %s933_s24  ;;  %s1302_s5 = smov 64   ;;  %vm769_vm5 = vcmask 785920   ;;  %vm775_vm6 = vcmask 1048320  }
  0x7e   : > { %s1303_s7 = smov 96   ;;  %s943_s30 = sshll.u32 %s1284_s15, 7 }
  0x7f   : > { %s792_s6 = sshll.u32 %s1608_s16, 4  ;;  %s1619_s1 = scalar_lea.hbm %s1672_s3, %s943_s30  ;;  %s1621_s6 = int_to_ptr.vmem [resolvable:$true] %s792_s6 }
  0x80   : > { %s778_s28 = scalar_lea.sflag [#allocation4], %s1535_s21  ;;  %s1206_s29 = scalar_lea.vmem %s1621_s6, 128 }
  0x81   : > { %p1207_p0 = scmp.ne.s32.totalorder %s1621_s6, %s1206_s29  ;;  %p1701_p10 = scmp.ne.s32.totalorder %s1687_s25, 0 }
  0x82   : > { %968 = vmatmul.mubr.msk.bf16.vlgmr.msra.gmra.mrb[0].mxu0 %vm299_vm1, %v287_v7  ;;  %974 = vmatmul.mubr.msk.bf16.vlgmr.msra.gmra.mrb[0].mxu1 %vm299_vm1, %v288_v8  ;;  %s1304_s15 = smov [#allocation8]  }
  0x83   : > { %978 = vmatpush3.bf16.xpose.msra.mxu0 %v396_v9  ;;  %984 = vmatpush3.bf16.xpose.msra.mxu1 %v442_v10  ;;  %p1208_p8 = pnand %p1207_p0, %p1701_p10  ;;  %s1210_s23 = sshll.u32 %s1304_s15, 4  ;;  %s1211_s23 = int_to_ptr.vmem [resolvable:$false] %s1210_s23 }
  0x84   : > { %979 = vmatprep.mubr.msk.bf16.mxu0 %vm1300_vm0, %v1299_v0  ;;  %985 = vmatprep.mubr.msk.bf16.mxu1 %vm1300_vm0, %v1299_v0  ;;  %s1212_s10 = scalar_lea.vmem %s1211_s23, 256  ;;  %p1213_p12 = scmp.lt.s32.totalorder %s1621_s6, %s1211_s23 }
  0x85   : > { %989 = vmatprep.subr.bf16.mxu0 %v1299_v0  ;;  %995 = vmatprep.subr.bf16.mxu1 %v1299_v0  ;;  %p1209_p9 = pneg %p1208_p8  ;;  %p1214_p1 = scmp.lt.s32.totalorder %s1212_s10, %s1206_s29 }
  0x87   : > { %p1215_p6 = por %p1214_p1, %p1213_p12 }
  0x89   : > { %p1216_p13 = pnand %p1215_p6, %p1209_p9 }
  0x8a   : > { %980 = vmatmul.mubr.msk.bf16.vlgmr.msra.gmra.mrb[4].mxu0 %vm299_vm1, %v289_v11  ;;  %986 = vmatmul.mubr.msk.bf16.vlgmr.msra.gmra.mrb[4].mxu1 %vm299_vm1, %v290_v12 }
  0x8b   : > { %991 = vmatprep.mubr.msk.bf16.mxu0 %vm1300_vm0, %v1299_v0  ;;  %997 = vmatprep.mubr.msk.bf16.mxu1 %vm1300_vm0, %v1299_v0 }
 0x155   : > { %v340_v13 = vpop.f32.mrb[0].mxu0  ;;  %v386_v14 = vpop.f32.mrb[0].mxu1 }
 0x156   : > { %v969_v15 = vpop.f32.mrb[1].mxu0  ;;  %v485_v16 = vsel %vm484_vm2, %v340_v13, -inf  ;;  %v975_v17 = vpop.f32.mrb[1].mxu1  ;;  %v488_v22 = vsel %vm484_vm2, %v386_v14, -inf }
 0x157   : > { %486 = vmax.xlane.f32.xlu0 %v485_v16  ;;  %v343_v18 = vpop.f32.mrb[2].mxu0  ;;  %v389_v19 = vpop.f32.mrb[2].mxu1 }
 0x158   : > { %v970_v20 = vpop.f32.mrb[3].mxu0  ;;  %v976_v21 = vpop.f32.mrb[3].mxu1 }
 0x15b   : > { %489 = vmax.xlane.f32.xlu0 %v488_v22  ;;  %v295_v22 = vld [vmem:[%s250_s18] sm:$0xf] }
 0x15d   : > { %v432_v23 = vpop.f32.mrb[4].mxu0  ;;  %v478_v24 = vpop.f32.mrb[4].mxu1 }
 0x15e   : > { %v981_v25 = vpop.f32.mrb[5].mxu0  ;;  %v491_v26 = vsel %vm484_vm2, %v432_v23, -inf  ;;  %v987_v27 = vpop.f32.mrb[5].mxu1  ;;  %v494_v32 = vsel %vm484_vm2, %v478_v24, -inf }
 0x15f   : > { %492 = vmax.xlane.f32.xlu1 %v491_v26  ;;  %v435_v28 = vpop.f32.mrb[6].mxu0  ;;  %v481_v29 = vpop.f32.mrb[6].mxu1  ;;  %v297_v26 = vld [vmem:[%s250_s18 + $0x8] sm:$0xf] }
 0x160   : > { %v982_v30 = vpop.f32.mrb[7].mxu0  ;;  %v988_v31 = vpop.f32.mrb[7].mxu1  ;;  %v670_v27 = vsel %vm576_vm3, %v297_v26, 0  ;;  %v298_v28 = vld [vmem:[%s250_s18 + $0xc] sm:$0xf] }
 0x161   : > { %v716_v29 = vsel %vm576_vm3, %v298_v28, 0 }
 0x163   : > { %495 = vmax.xlane.f32.xlu1 %v494_v32 }
 0x1e4   : > { %v487_v33 = vpop.xlane.xlu0 %486 }
 0x1e5   : > { %v497_v34 = vsub.f32 %v340_v13, %v487_v33 }
 0x1e7   : > { %v501_v35 = vmul.f32 1.442695, %v497_v34 }
 0x1e8   : > { %v490_v36 = vpop.xlane.xlu0 %489 }
 0x1e9   : > { %1092 = vpow2.f32 %v501_v35  ;;  %v498_v37 = vsub.f32 %v386_v14, %v490_v36 }
 0x1eb   : > { %v503_v38 = vmul.f32 1.442695, %v498_v37 }
 0x1ec   : > { %v493_v39 = vpop.xlane.xlu1 %492 }
 0x1ed   : > { %1094 = vpow2.f32 %v503_v38  ;;  %v499_v40 = vsub.f32 %v432_v23, %v493_v39  ;;  %v578_v23 = vsel %vm576_vm3, %v295_v22, 0 }
 0x1ee   : > { %990 = vmatpush3.bf16.msra.mxu0 %v578_v23 }
 0x1ef   : > { %v505_v41 = vmul.f32 1.442695, %v499_v40  ;;  %1001 = vmatprep.subr.bf16.mxu0 %v1299_v0 }
 0x1f0   : > { %v496_v42 = vpop.xlane.xlu1 %495 }
 0x1f1   : > { %1096 = vpow2.f32 %v505_v41  ;;  %v500_v43 = vsub.f32 %v478_v24, %v496_v42  ;;  %v296_v24 = vld [vmem:[%s250_s18 + $0x4] sm:$0xf] }
 0x1f2   : > { %v624_v25 = vsel %vm576_vm3, %v296_v24, 0 }
 0x1f3   : > { %v1093_v44 = vpop.eup %1092  ;;  %v507_v45 = vmul.f32 1.442695, %v500_v43  ;;  %996 = vmatpush3.bf16.msra.mxu1 %v624_v25 }
 0x1f4   : > { %v509_v46 = vsel %vm484_vm2, %v1093_v44, 0.0  ;;  %1007 = vmatprep.subr.bf16.mxu1 %v1299_v0 }
 0x1f5   : > { %1098 = vpow2.f32 %v507_v45  ;;  %510 = vadd.xlane.f32.xlu0 %v509_v46 }
 0x1f7   : > { %v1095_v47 = vpop.eup %1094 }
 0x1f8   : > { %v512_v48 = vsel %vm484_vm2, %v1095_v47, 0.0 }
 0x1f9   : > { %513 = vadd.xlane.f32.xlu1 %v512_v48 }
 0x1fb   : > { %v1097_v49 = vpop.eup %1096 }
 0x1fc   : > { %v515_v50 = vsel %vm484_vm2, %v1097_v49, 0.0 }
 0x1fd   : > { %516 = vadd.xlane.f32.xlu0 %v515_v50 }
 0x1ff   : > { %v1099_v51 = vpop.eup %1098 }
 0x200   : > { %v518_v52 = vsel %vm484_vm2, %v1099_v51, 0.0 }
 0x201   : > { %519 = vadd.xlane.f32.xlu1 %v518_v52 }
 0x282   : > { %v511_v53 = vpop.xlane.xlu0 %510 }
 0x283   : > { %1100 = vrcp.f32 %v511_v53 }
 0x286   : > { %v514_v54 = vpop.xlane.xlu1 %513 }
 0x287   : > { %1102 = vrcp.f32 %v514_v54 }
 0x28a   : > { %v517_v55 = vpop.xlane.xlu0 %516 }
 0x28b   : > { %1104 = vrcp.f32 %v517_v55 }
 0x28d   : > { %v1101_v56 = vpop.eup %1100 }
 0x28e   : > { %v520_v57 = vpop.xlane.xlu1 %519  ;;  %v525_v58 = vmul.f32 %v1101_v56, %v1093_v44 }
 0x28f   : > { %1106 = vrcp.f32 %v520_v57 }
 0x290   : > { %v529_v59 = vmul.f32 %v525_v58, %v525_v58 }
 0x291   : > { %v1103_v60 = vpop.eup %1102 }
 0x292   : > { %v533_v61 = vmul.f32 %v529_v59, %v529_v59  ;;  %v526_v62 = vmul.f32 %v1103_v60, %v1095_v47 }
 0x294   : > { %v537_v63 = vmul.f32 %v533_v61, %v525_v58  ;;  %v530_v1 = vmul.f32 %v526_v62, %v526_v62 }
 0x295   : > { %v1105_v2 = vpop.eup %1104 }
 0x296   : > { %v541_v3 = vsel %vm484_vm2, %v537_v63, 0.0  ;;  %v557_v4 = vadd.f32 %v537_v63, %v525_v58  ;;  %v534_v5 = vmul.f32 %v530_v1, %v530_v1  ;;  %v527_v6 = vmul.f32 %v1105_v2, %v1097_v49 }
 0x297   : > { %542 = vadd.xlane.f32.xlu0 %v541_v3 }
 0x298   : > { %v538_v7 = vmul.f32 %v534_v5, %v526_v62  ;;  %v531_v8 = vmul.f32 %v527_v6, %v527_v6 }
 0x299   : > { %v1107_v9 = vpop.eup %1106 }
 0x29a   : > { %v544_v10 = vsel %vm484_vm2, %v538_v7, 0.0  ;;  %v558_v11 = vadd.f32 %v538_v7, %v526_v62  ;;  %v535_v12 = vmul.f32 %v531_v8, %v531_v8  ;;  %v528_v13 = vmul.f32 %v1107_v9, %v1099_v51 }
 0x29b   : > { %545 = vadd.xlane.f32.xlu1 %v544_v10 }
 0x29c   : > { %v539_v14 = vmul.f32 %v535_v12, %v527_v6  ;;  %v532_v15 = vmul.f32 %v528_v13, %v528_v13 }
 0x29e   : > { %v547_v16 = vsel %vm484_vm2, %v539_v14, 0.0  ;;  %v559_v17 = vadd.f32 %v539_v14, %v527_v6  ;;  %v536_v18 = vmul.f32 %v532_v15, %v532_v15 }
 0x29f   : > { %548 = vadd.xlane.f32.xlu0 %v547_v16 }
 0x2a0   : > { %v540_v19 = vmul.f32 %v536_v18, %v528_v13 }
 0x2a2   : > { %v550_v20 = vsel %vm484_vm2, %v540_v19, 0.0  ;;  %v560_v21 = vadd.f32 %v540_v19, %v528_v13 }
 0x2a3   : > { %551 = vadd.xlane.f32.xlu1 %v550_v20 }
 0x324   : > { %v543_v30 = vpop.xlane.xlu0 %542 }
 0x325   : > { %v553_v31 = vadd.f32 1.0, %v543_v30 }
 0x327   : > { %1108 = vrcp.f32 %v553_v31 }
 0x328   : > { %v546_v32 = vpop.xlane.xlu1 %545 }
 0x329   : > { %v554_v33 = vadd.f32 1.0, %v546_v32 }
 0x32b   : > { %1110 = vrcp.f32 %v554_v33 }
 0x32c   : > { %v549_v34 = vpop.xlane.xlu0 %548 }
 0x32d   : > { %v555_v35 = vadd.f32 1.0, %v549_v34 }
 0x32f   : > { %1112 = vrcp.f32 %v555_v35 }
 0x330   : > { %v552_v36 = vpop.xlane.xlu1 %551 }
 0x331   : > { %v1109_v37 = vpop.eup %1108  ;;  %v556_v38 = vadd.f32 1.0, %v552_v36 }
 0x332   : > { %v565_v39 = vmul.f32 %v1109_v37, %v557_v4 }
 0x333   : > { %1114 = vrcp.f32 %v556_v38 }
 0x334   : > { %v569_v40 = vpack.c.bf16 %v565_v39, %v565_v39 }
 0x335   : > { %v1111_v41 = vpop.eup %1110 }
 0x336   : > { %v566_v42 = vmul.f32 %v1111_v41, %v558_v11  ;;  %992 = vmatmul.mubr.msk.bf16.vlgmr.msra.gmra.mrb[8].mxu0 %vm484_vm2, %v569_v40 }
 0x337   : > { %1002 = vmatpush3.bf16.msra.mxu0 %v670_v27  ;;  %1003 = vmatprep.mubr.msk.bf16.mxu0 %vm1300_vm0, %v1299_v0 }
 0x338   : > { %v570_v43 = vpack.c.bf16 %v566_v42, %v566_v42 }
 0x339   : > { %v1113_v44 = vpop.eup %1112 }
 0x33a   : > { %v567_v45 = vmul.f32 %v1113_v44, %v559_v17  ;;  %998 = vmatmul.mubr.msk.bf16.vlgmr.msra.gmra.mrb[8].mxu1 %vm484_vm2, %v570_v43 }
 0x33b   : > { %1008 = vmatpush3.bf16.msra.mxu1 %v716_v29  ;;  %1009 = vmatprep.mubr.msk.bf16.mxu1 %vm1300_vm0, %v1299_v0 }
 0x33c   : > { %v571_v46 = vpack.c.bf16 %v567_v45, %v567_v45 }
 0x33d   : > { %v1115_v47 = vpop.eup %1114 }
 0x33e   : > { %v568_v48 = vmul.f32 %v1115_v47, %v560_v21  ;;  %1004 = vmatmul.mubr.msk.bf16.vlgmr.msra.gmra.mrb[12].mxu0 %vm484_vm2, %v571_v46 }
 0x340   : > { %v572_v49 = vpack.c.bf16 %v568_v48, %v568_v48 }
 0x342   : > { %1010 = vmatmul.mubr.msk.bf16.vlgmr.msra.gmra.mrb[12].mxu1 %vm484_vm2, %v572_v49 }
 0x409   : > { %v614_v50 = vpop.f32.mrb[8].mxu0 }
 0x40a   : > { %758 = vst.msk [vmem:[%s1608_s16] sm:$0xff] %vm299_vm1, %v614_v50  ;;  %v993_v51 = vpop.f32.mrb[9].mxu0 }
 0x40b   : > { %v617_v52 = vpop.f32.mrb[10].mxu0 }
 0x40c   : > { %v994_v53 = vpop.f32.mrb[11].mxu0 }
 0x40d   : > { %v660_v54 = vpop.f32.mrb[8].mxu1 }
 0x40e   : > { %760 = vrot.lane.b32.xlu0 %v660_v54, %s1301_s20  ;;  %v999_v0 = vpop.f32.mrb[9].mxu1 }
 0x40f   : > { %v663_v55 = vpop.f32.mrb[10].mxu1 }
 0x410   : > { %v1000_v56 = vpop.f32.mrb[11].mxu1 }
 0x411   : > { %v706_v57 = vpop.f32.mrb[12].mxu0 }
 0x412   : > { %766 = vrot.lane.b32.xlu1 %v706_v57, %s1302_s5  ;;  %v1005_v58 = vpop.f32.mrb[13].mxu0 }
 0x413   : > { %v709_v59 = vpop.f32.mrb[14].mxu0 }
 0x414   : > { %v1006_v60 = vpop.f32.mrb[15].mxu0 }
 0x415   : > { %v752_v61 = vpop.f32.mrb[12].mxu1 }
 0x416   : > { %v1011_v62 = vpop.f32.mrb[13].mxu1  ;;  %772 = vrot.lane.b32.xlu1 %v752_v61, %s1303_s7 }
 0x417   : > { %v755_v63 = vpop.f32.mrb[14].mxu1 }
 0x418   : > { %v1012_v1 = vpop.f32.mrb[15].mxu1 }
 0x480   : > { %v761_v2 = vpop.permute.xlu0 %760 }
 0x481   : > { %764 = vst.msk [vmem:[%s1608_s16] sm:$0xff] %vm763_vm4, %v761_v2 }
 0x484   : > { %v767_v3 = vpop.permute.xlu1 %766 }
 0x485   : > { %770 = vst.msk [vmem:[%s1608_s16] sm:$0xff] %vm769_vm5, %v767_v3 }
 0x488   : > { %v773_v4 = vpop.permute.xlu1 %772 }
 0x489   : > { %776 = vst.msk [vmem:[%s1608_s16] sm:$0xff] %vm775_vm6, %v773_v4 }
 0x48a   : > { %1219 = shalt.err (!%p1216_p13)
}
 0x48b   : > { %s1220_s21 = scalar_lea.hbm %s1619_s1, 128  ;;  %s1224_s11 = scalar_lea.hbm %s1672_s3, 256 }
 0x48c   : > { %p1221_p11 = scmp.ne.s32.totalorder %s1619_s1, %s1220_s21  ;;  %p1225_p7 = scmp.lt.u32.totalorder %s1619_s1, %s1672_s3 }
 0x48d   : > { %p1226_p4 = scmp.lt.u32.totalorder %s1224_s11, %s1220_s21  ;;  %p1228_p0 = scmp.lt.u32.totalorder %s1220_s21, %s1619_s1 }
 0x48e   : > { %p1222_p2 = pnand %p1221_p11, %p1701_p10 }
 0x48f   : > { %p1227_p3 = por %p1226_p4, %p1225_p7 }
 0x490   : > { %p1223_p5 = pneg %p1222_p2 }
 0x491   : > { %p1229_p8 = por %p1228_p0, %p1227_p3 }
 0x493   : > { %p1230_p9 = pnand %p1229_p8, %p1223_p5 }
 0x495   : > { %1233 = shalt.err (!%p1230_p9)
}
 0x496   : > { %1019 = dma.vmem_to_hbm [thread:$0]  (%p1701_p10), %s1621_s6, 128, %s1619_s1, %s778_s28  }
 0x497 PF: > { %s804_s18 = sand.u32 1, %s1272_s12   ;;  %p1702_p12 = scmp.ne.s32.totalorder %s1689_s27, 0 }
 0x498   : > { %p1703_p1 = scmp.ge.s32.totalorder %s1292_s17, 2  ;;  %s805_s24 = scalar_lea.sflag [#allocation4], %s804_s18 }
 0x49a   : > { %p1032_p6 = pnand %p1703_p1, %p1702_p12 }
 0x49c   : > { %1267 = dma.done.wait (!%p1032_p6), %s805_s24, 128  }
 0x49d   : > { %1269 = vsyncadd (!%p1032_p6), %s805_s24, 4294967168  ;;  %s22_s17 = sadd.s32 1, %s1292_s17   ;;  %s1704_s25 = sld [smem:[#allocation14_spill]] }
 0x49e   : > { %p19_p13 = scmp.ge.s32.totalorder %s22_s17, 4   ;;  %s1705_s15 = sld [smem:[#allocation12_spill]] }
 0x49f   : > { %s1706_s16 = sld [smem:[#allocation13_spill]]  ;;  %s1707_s12 = smov %s1276_s13 }
 0x4a0   : > { %s1708_s13 = smov %s1280_s14  ;;  %21 = sbr.rel (!%p19_p13) target bundleno = 10 (0xa), region = 101 }
 0x4a3   : > { %s1709_s14 = smov %s1704_s25 }
 0x4a7   :  { %810 = vsyncpa [#allocation3], 1 }
 0x4a8   :  { %812 = vsyncpa [#allocation3 + $0x1], 1 }
 0x4a9   :  { %813 = vsyncpa [#allocation6], 1 }
 0x4aa   :  { %815 = vsyncpa [#allocation6 + $0x1], 1 }
 0x4ab   :  { %816 = vsyncpa [#allocation4], 1 }
 0x4ac   :  { %818 = vsyncpa [#allocation4 + $0x1], 1 }

</bundles_post_ra>
